<compile_context>
chip_gen: v7x
topology: tpu7x:2x2x1
jax: 0.10.0
libtpu: 0.0.40
codegen_flags: <defaults>
</compile_context>

<pallas_src>
import functools

import jax
import jax.numpy as jnp
from jax.experimental import pallas as pl
from jax.experimental.pallas import tpu as pltpu


def _layernorm(x, w, b, eps=1e-5):
    mu = jnp.mean(x, axis=-1, keepdims=True)
    var = jnp.mean(jnp.square(x - mu), axis=-1, keepdims=True)
    return (x - mu) * jax.lax.rsqrt(var + eps) * w + b


def encoder_block_kernel(x_ref, add_ref,
                         in_wt_ref, in_b_ref, out_wr_ref, out_b_ref,
                         ln1_w_ref, ln1_b_ref,
                         w1x_t_ref, w1a_t_ref, b1_ref,
                         w2_t_ref, b2_ref,
                         ln2_w_ref, ln2_b_ref,
                         o_ref, *, num_heads, batch_per_step, seq_len):
    x = x_ref[0]                        # (R, E) f32, R = batch_per_step * seq_len
    add = add_ref[0]                    # (R, DD) bf16
    R, E = x.shape
    H = num_heads
    Dh = E // H
    S = seq_len

    # Fused QKV projection over all rows in this step (1/sqrt(Dh) already folded
    # into the Q rows of weight and bias).  bf16 operands, f32 accumulation.
    qkv = (jnp.dot(x.astype(jnp.bfloat16), in_wt_ref[...],
                   preferred_element_type=jnp.float32) + in_b_ref[...])     # (R, 3E)

    # DINO branch of the FFN (concat-free split of w1): attention-independent term.
    h_add = jnp.dot(add, w1a_t_ref[...],
                    preferred_element_type=jnp.float32)                      # (R, F)

    out_wr = out_wr_ref[...]            # (H, Dh, E) f32

    # Attention: batched over heads with a single leading batch dim.
    # batch_per_step == 1 for the shapes used here, so the loop is trivially
    # unrolled; for large B the attention dots would be batched over (B*H) groups.
    attn_rows = []
    for b in range(batch_per_step):
        rows = slice(b * S, (b + 1) * S)
        q = qkv[rows, 0:E].reshape(S, H, Dh).transpose(1, 0, 2)              # (H, S, Dh)
        k = qkv[rows, E:2 * E].reshape(S, H, Dh).transpose(1, 0, 2)
        v = qkv[rows, 2 * E:3 * E].reshape(S, H, Dh).transpose(1, 0, 2)

        s = jnp.einsum('hsd,htd->hst', q, k,
                       preferred_element_type=jnp.float32)                   # (H, S, S)
        s = s - jnp.max(s, axis=-1, keepdims=True)
        p = jnp.exp(s)
        p = p / jnp.sum(p, axis=-1, keepdims=True)                           # exact softmax

        ctx = jnp.einsum('hst,htd->hsd', p, v,
                         preferred_element_type=jnp.float32)                 # (H, S, Dh)
        # Head merge + output projection fused:
        #   attn[s, e] = sum_{h, d} ctx[h, s, d] * Wout_r[h, d, e]
        y = jnp.einsum('hsd,hde->hse', ctx, out_wr,
                       preferred_element_type=jnp.float32)                   # (H, S, E)
        attn_rows.append(jnp.sum(y, axis=0))                                 # (S, E)
    attn = attn_rows[0] if batch_per_step == 1 else jnp.concatenate(attn_rows, axis=0)
    attn = attn + out_b_ref[...]

    # Residual + LayerNorm1 (dropout == identity in eval mode).
    x1 = _layernorm(x + attn, ln1_w_ref[...], ln1_b_ref[...])

    # Concat-free DINO FFN: [x1, add] @ w1^T == x1 @ w1_x^T + add @ w1_add^T.
    h1 = (jnp.dot(x1.astype(jnp.bfloat16), w1x_t_ref[...],
                  preferred_element_type=jnp.float32) + h_add + b1_ref[...])
    h1 = jnp.maximum(h1, 0.0)
    ffn = (jnp.dot(h1.astype(jnp.bfloat16), w2_t_ref[...],
                   preferred_element_type=jnp.float32) + b2_ref[...])

    # Residual + LayerNorm2.
    out = _layernorm(x1 + ffn, ln2_w_ref[...], ln2_b_ref[...])
    o_ref[0] = out.astype(o_ref.dtype)


def transformer_encoder_block(x_sbe, addition_sbe, params, num_heads):
    """x_sbe: (S, B, E) f32, addition_sbe: (S, B, 768) f32. Returns (S, B, E) f32."""
    S, B, E = x_sbe.shape
    DD = addition_sbe.shape[-1]
    F = params["w1"].shape[0]
    H = num_heads
    Dh = E // H

    # 2-way "parallel" grid so v7x maps one step per TensorCore; B/NC batch
    # elements are folded into each step (single step when B is odd / == 1).
    NC = 2 if (B >= 2 and B % 2 == 0) else 1
    Bc = B // NC
    R = Bc * S

    # Row-major (batch-major) views of the activations, pre-split by grid step so
    # every block equals the full array in its last two dims (no tiling-rule
    # issues for the bf16 `addition`).  The (S,B,E)->(B,S,E) transpose is a 2 KiB
    # relayout at these shapes; consume (S,B,E) directly if S/B ever grow.
    x3 = jnp.transpose(x_sbe, (1, 0, 2)).reshape(NC, R, E)                      # f32
    add3 = jnp.transpose(addition_sbe, (1, 0, 2)).reshape(NC, R, DD).astype(jnp.bfloat16)

    bf = lambda a: a.astype(jnp.bfloat16)
    scale = 1.0 / (Dh ** 0.5)
    # Fold the attention scale into the Q rows of the in-projection (weight and
    # bias), pre-transpose / pre-split all weights once, cast big matmul weights
    # to bf16.  out_w is pre-reshaped to (H, Dh, E) so the head-merge + output
    # projection is a single batched dot in the kernel.
    in_w_eff = jnp.concatenate([params["in_w"][:E] * scale, params["in_w"][E:]], axis=0)
    in_b_eff = jnp.concatenate([params["in_b"][:E] * scale, params["in_b"][E:]])
    in_w_t = bf(in_w_eff.T)                                  # (E, 3E)
    out_w_r = params["out_w"].T.reshape(H, Dh, E)            # (H, Dh, E), f32
    w1_x_t = bf(params["w1"][:, :E].T)                       # (E, F)
    w1_a_t = bf(params["w1"][:, E:].T)                       # (DD, F)
    w2_t = bf(params["w2"].T)                                # (F, E)

    r2 = lambda v: v.reshape(1, -1)                          # vector params -> (1, N) f32

    def const_spec(shape):
        n = len(shape)
        return pl.BlockSpec(shape, lambda c, _n=n: (0,) * _n)

    in_specs = [
        pl.BlockSpec((1, R, E), lambda c: (c, 0, 0)),        # x rows for this step
        pl.BlockSpec((1, R, DD), lambda c: (c, 0, 0)),       # addition rows (bf16)
        const_spec((E, 3 * E)), const_spec((1, 3 * E)),
        const_spec((H, Dh, E)), const_spec((1, E)),
        const_spec((1, E)), const_spec((1, E)),
        const_spec((E, F)), const_spec((DD, F)), const_spec((1, F)),
        const_spec((F, E)), const_spec((1, E)),
        const_spec((1, E)), const_spec((1, E)),
    ]

    kern = functools.partial(encoder_block_kernel, num_heads=H,
                             batch_per_step=Bc, seq_len=S)
    out3 = pl.pallas_call(
        kern,
        out_shape=jax.ShapeDtypeStruct((NC, R, E), x_sbe.dtype),
        grid=(NC,),
        in_specs=in_specs,
        out_specs=pl.BlockSpec((1, R, E), lambda c: (c, 0, 0)),
        compiler_params=pltpu.CompilerParams(dimension_semantics=("parallel",)),
    )(x3, add3,
      in_w_t, r2(in_b_eff),
      out_w_r, r2(params["out_b"]),
      r2(params["ln1_w"]), r2(params["ln1_b"]),
      w1_x_t, w1_a_t, r2(params["b1"]),
      w2_t, r2(params["b2"]),
      r2(params["ln2_w"]), r2(params["ln2_b"]))
    return jnp.transpose(out3.reshape(B, S, E), (1, 0, 2))


def reference(x_sbe, add_sbe, p, num_heads):
    """Plain-JAX f32 mirror of the PyTorch forward (eval mode), for validation."""
    S, B, E = x_sbe.shape
    Dh = E // num_heads

    def per_batch(xb, ab):
        q = xb @ p["in_w"][:E].T + p["in_b"][:E]
        k = xb @ p["in_w"][E:2 * E].T + p["in_b"][E:2 * E]
        v = xb @ p["in_w"][2 * E:].T + p["in_b"][2 * E:]
        qh = q.reshape(S, num_heads, Dh).transpose(1, 0, 2) / jnp.sqrt(Dh)
        kh = k.reshape(S, num_heads, Dh).transpose(1, 0, 2)
        vh = v.reshape(S, num_heads, Dh).transpose(1, 0, 2)
        s = jnp.einsum("hsd,htd->hst", qh, kh)
        pm = jax.nn.softmax(s, axis=-1)
        o = jnp.einsum("hst,htd->hsd", pm, vh).transpose(1, 0, 2).reshape(S, E)
        attn = o @ p["out_w"].T + p["out_b"]
        x1 = _layernorm(xb + attn, p["ln1_w"], p["ln1_b"])
        xc = jnp.concatenate([x1, ab], axis=-1)
        h1 = jax.nn.relu(xc @ p["w1"].T + p["b1"])
        ffn = h1 @ p["w2"].T + p["b2"]
        return _layernorm(x1 + ffn, p["ln2_w"], p["ln2_b"])

    out = jax.vmap(per_batch)(jnp.transpose(x_sbe, (1, 0, 2)),
                              jnp.transpose(add_sbe, (1, 0, 2)))
    return jnp.transpose(out, (1, 0, 2))


if __name__ == "__main__":
    # Small shapes consistent with the module: seq=8, batch=2, embed_dim=32,
    # num_heads=4, feedforward_dim=64, DINO feature dim hard-coded to 768.
    S, B, E, H, F, DD = 8, 2, 32, 4, 64, 768

    key = jax.random.PRNGKey(0)
    ks = jax.random.split(key, 12)
    init = lambda k, shape, s=0.05: jax.random.normal(k, shape, jnp.float32) * s

    params = dict(
        in_w=init(ks[0], (3 * E, E)), in_b=init(ks[1], (3 * E,)),
        out_w=init(ks[2], (E, E)), out_b=init(ks[3], (E,)),
        ln1_w=jnp.ones((E,), jnp.float32), ln1_b=jnp.zeros((E,), jnp.float32),
        w1=init(ks[4], (F, E + DD)), b1=init(ks[5], (F,)),
        w2=init(ks[6], (E, F)), b2=init(ks[7], (E,)),
        ln2_w=jnp.ones((E,), jnp.float32), ln2_b=jnp.zeros((E,), jnp.float32),
    )

    x = jax.random.normal(ks[8], (S, B, E), jnp.float32)
    addition = jax.random.normal(ks[9], (S, B, DD), jnp.float32)

    out = transformer_encoder_block(x, addition, params, H)
    out = jax.block_until_ready(out)
    assert out.shape == (S, B, E), out.shape

    ref = reference(x, addition, params, H)
    max_err = float(jnp.max(jnp.abs(out - ref)))
    # The kernel uses bf16 matmul operands (per perf review) with f32
    # accumulation; vs. the exact-f32 reference the error budget is ~1e-2
    # typical / a few e-2 worst case at these magnitudes.
    assert max_err < 7.5e-2, max_err

    print("KERNEL_OK")
</pallas_src>

<mosaic_0001>
module attributes {stable_mosaic.version = 11 : i64} {
  func.func @encoder_block_kernel(%arg0: i32, %arg1: memref<1x8x32xf32, #tpu.memory_space<vmem>>, %arg2: memref<1x8x768xbf16, #tpu.memory_space<vmem>>, %arg3: memref<32x96xbf16, #tpu.memory_space<vmem>>, %arg4: memref<1x96xf32, #tpu.memory_space<vmem>>, %arg5: memref<4x8x32xf32, #tpu.memory_space<vmem>>, %arg6: memref<1x32xf32, #tpu.memory_space<vmem>>, %arg7: memref<1x32xf32, #tpu.memory_space<vmem>>, %arg8: memref<1x32xf32, #tpu.memory_space<vmem>>, %arg9: memref<32x64xbf16, #tpu.memory_space<vmem>>, %arg10: memref<768x64xbf16, #tpu.memory_space<vmem>>, %arg11: memref<1x64xf32, #tpu.memory_space<vmem>>, %arg12: memref<64x32xbf16, #tpu.memory_space<vmem>>, %arg13: memref<1x32xf32, #tpu.memory_space<vmem>>, %arg14: memref<1x32xf32, #tpu.memory_space<vmem>>, %arg15: memref<1x32xf32, #tpu.memory_space<vmem>>, %arg16: memref<1x8x32xf32, #tpu.memory_space<vmem>>) attributes {dimension_semantics = [#tpu.dimension_semantics<parallel>], iteration_bounds = array<i64: 2>, scalar_prefetch = 0 : i64, scratch_operands = 0 : i64, tpu.core_type = #tpu.core_type<tc>, window_params = [{transform_indices = @transform_0, window_bounds = array<i64: 1, 8, 32>}, {transform_indices = @transform_1, window_bounds = array<i64: 1, 8, 768>}, {pipeline_mode = #tpu.pipeline_mode<synchronous>, transform_indices = @transform_2, window_bounds = array<i64: 32, 96>}, {pipeline_mode = #tpu.pipeline_mode<synchronous>, transform_indices = @transform_3, window_bounds = array<i64: 1, 96>}, {pipeline_mode = #tpu.pipeline_mode<synchronous>, transform_indices = @transform_4, window_bounds = array<i64: 4, 8, 32>}, {pipeline_mode = #tpu.pipeline_mode<synchronous>, transform_indices = @transform_5, window_bounds = array<i64: 1, 32>}, {pipeline_mode = #tpu.pipeline_mode<synchronous>, transform_indices = @transform_6, window_bounds = array<i64: 1, 32>}, {pipeline_mode = #tpu.pipeline_mode<synchronous>, transform_indices = @transform_7, window_bounds = array<i64: 1, 32>}, {pipeline_mode = #tpu.pipeline_mode<synchronous>, transform_indices = @transform_8, window_bounds = array<i64: 32, 64>}, {pipeline_mode = #tpu.pipeline_mode<synchronous>, transform_indices = @transform_9, window_bounds = array<i64: 768, 64>}, {pipeline_mode = #tpu.pipeline_mode<synchronous>, transform_indices = @transform_10, window_bounds = array<i64: 1, 64>}, {pipeline_mode = #tpu.pipeline_mode<synchronous>, transform_indices = @transform_11, window_bounds = array<i64: 64, 32>}, {pipeline_mode = #tpu.pipeline_mode<synchronous>, transform_indices = @transform_12, window_bounds = array<i64: 1, 32>}, {pipeline_mode = #tpu.pipeline_mode<synchronous>, transform_indices = @transform_13, window_bounds = array<i64: 1, 32>}, {pipeline_mode = #tpu.pipeline_mode<synchronous>, transform_indices = @transform_14, window_bounds = array<i64: 1, 32>}, {transform_indices = @transform_15, window_bounds = array<i64: 1, 8, 32>}]} {
    %c0 = arith.constant 0 : index
    %c0_0 = arith.constant 0 : index
    %c0_1 = arith.constant 0 : index
    %0 = vector.load %arg1[%c0, %c0_0, %c0_1] : memref<1x8x32xf32, #tpu.memory_space<vmem>>, vector<1x8x32xf32>
    %1 = vector.shape_cast %0 : vector<1x8x32xf32> to vector<8x32xf32>
    %c0_2 = arith.constant 0 : index
    %c0_3 = arith.constant 0 : index
    %c0_4 = arith.constant 0 : index
    %2 = vector.load %arg2[%c0_2, %c0_3, %c0_4] : memref<1x8x768xbf16, #tpu.memory_space<vmem>>, vector<1x8x768xbf16>
    %3 = vector.shape_cast %2 : vector<1x8x768xbf16> to vector<8x768xbf16>
    %4 = arith.truncf %1 : vector<8x32xf32> to vector<8x32xbf16>
    %c0_5 = arith.constant 0 : index
    %c0_6 = arith.constant 0 : index
    %5 = vector.load %arg3[%c0_5, %c0_6] : memref<32x96xbf16, #tpu.memory_space<vmem>>, vector<32x96xbf16>
    %cst = arith.constant dense<0.000000e+00> : vector<8x96xf32>
    %6 = tpu.matmul %4, %5, %cst {dimension_numbers = #tpu.dot_dimension_numbers<[1], [0], [0], [1], [0, 0, 1, 1], [], []>} : vector<8x32xbf16>, vector<32x96xbf16>, vector<8x96xf32> -> vector<8x96xf32>
    %c0_7 = arith.constant 0 : index
    %c0_8 = arith.constant 0 : index
    %7 = vector.load %arg4[%c0_7, %c0_8] : memref<1x96xf32, #tpu.memory_space<vmem>>, vector<1x96xf32>
    %8 = vector.broadcast %7 : vector<1x96xf32> to vector<8x96xf32>
    %9 = arith.addf %6, %8 : vector<8x96xf32>
    %c0_9 = arith.constant 0 : index
    %c0_10 = arith.constant 0 : index
    %10 = vector.load %arg10[%c0_9, %c0_10] : memref<768x64xbf16, #tpu.memory_space<vmem>>, vector<768x64xbf16>
    %cst_11 = arith.constant dense<0.000000e+00> : vector<8x64xf32>
    %11 = tpu.matmul %3, %10, %cst_11 {dimension_numbers = #tpu.dot_dimension_numbers<[1], [0], [0], [1], [0, 0, 1, 1], [], []>} : vector<8x768xbf16>, vector<768x64xbf16>, vector<8x64xf32> -> vector<8x64xf32>
    %c0_12 = arith.constant 0 : index
    %c0_13 = arith.constant 0 : index
    %c0_14 = arith.constant 0 : index
    %12 = vector.load %arg5[%c0_12, %c0_13, %c0_14] : memref<4x8x32xf32, #tpu.memory_space<vmem>>, vector<4x8x32xf32>
    %13 = vector.extract_strided_slice %9 {offsets = [0, 0], sizes = [8, 32], strides = [1, 1]} : vector<8x96xf32> to vector<8x32xf32>
    %14 = vector.shape_cast %13 : vector<8x32xf32> to vector<8x4x8xf32>
    %15 = tpu.transpose %14, [1, 0, 2] : vector<8x4x8xf32> -> vector<4x8x8xf32>
    %16 = vector.extract_strided_slice %9 {offsets = [0, 32], sizes = [8, 32], strides = [1, 1]} : vector<8x96xf32> to vector<8x32xf32>
    %17 = vector.shape_cast %16 : vector<8x32xf32> to vector<8x4x8xf32>
    %18 = tpu.transpose %17, [1, 0, 2] : vector<8x4x8xf32> -> vector<4x8x8xf32>
    %19 = vector.extract_strided_slice %9 {offsets = [0, 64], sizes = [8, 32], strides = [1, 1]} : vector<8x96xf32> to vector<8x32xf32>
    %20 = vector.shape_cast %19 : vector<8x32xf32> to vector<8x4x8xf32>
    %21 = tpu.transpose %20, [1, 0, 2] : vector<8x4x8xf32> -> vector<4x8x8xf32>
    "tpu.trace_start"() <{level = 10 : i32, message = "hsd,htd->hst"}> : () -> ()
    %cst_15 = arith.constant dense<0.000000e+00> : vector<4x8x8xf32>
    %22 = tpu.matmul %15, %18, %cst_15 {dimension_numbers = #tpu.dot_dimension_numbers<[2], [2], [1], [1], [0, 0, 0, 1, 1, 1], [0], [0]>} : vector<4x8x8xf32>, vector<4x8x8xf32>, vector<4x8x8xf32> -> vector<4x8x8xf32>
    "tpu.trace_stop"() : () -> ()
    %cst_16 = arith.constant dense<0xFF800000> : vector<4x8xf32>
    %23 = vector.multi_reduction <maximumf>, %22, %cst_16 [2] : vector<4x8x8xf32> to vector<4x8xf32>
    %24 = vector.shape_cast %23 : vector<4x8xf32> to vector<4x8x1xf32>
    %25 = vector.broadcast %24 : vector<4x8x1xf32> to vector<4x8x8xf32>
    %26 = arith.subf %22, %25 : vector<4x8x8xf32>
    %27 = math.exp %26 : vector<4x8x8xf32>
    %cst_17 = arith.constant dense<0.000000e+00> : vector<4x8xf32>
    %28 = vector.multi_reduction <add>, %27, %cst_17 [2] : vector<4x8x8xf32> to vector<4x8xf32>
    %29 = vector.shape_cast %28 : vector<4x8xf32> to vector<4x8x1xf32>
    %30 = vector.broadcast %29 : vector<4x8x1xf32> to vector<4x8x8xf32>
    %31 = arith.divf %27, %30 : vector<4x8x8xf32>
    "tpu.trace_start"() <{level = 10 : i32, message = "hst,htd->hsd"}> : () -> ()
    %cst_18 = arith.constant dense<0.000000e+00> : vector<4x8x8xf32>
    %32 = tpu.matmul %31, %21, %cst_18 {dimension_numbers = #tpu.dot_dimension_numbers<[2], [1], [1], [2], [0, 0, 0, 1, 1, 2], [0], [0]>} : vector<4x8x8xf32>, vector<4x8x8xf32>, vector<4x8x8xf32> -> vector<4x8x8xf32>
    "tpu.trace_stop"() : () -> ()
    "tpu.trace_start"() <{level = 10 : i32, message = "hsd,hde->hse"}> : () -> ()
    %cst_19 = arith.constant dense<0.000000e+00> : vector<4x8x32xf32>
    %33 = tpu.matmul %32, %12, %cst_19 {dimension_numbers = #tpu.dot_dimension_numbers<[2], [1], [1], [2], [0, 0, 0, 1, 1, 2], [0], [0]>} : vector<4x8x8xf32>, vector<4x8x32xf32>, vector<4x8x32xf32> -> vector<4x8x32xf32>
    "tpu.trace_stop"() : () -> ()
    %cst_20 = arith.constant dense<0.000000e+00> : vector<8x32xf32>
    %34 = vector.multi_reduction <add>, %33, %cst_20 [0] : vector<4x8x32xf32> to vector<8x32xf32>
    %c0_21 = arith.constant 0 : index
    %c0_22 = arith.constant 0 : index
    %35 = vector.load %arg6[%c0_21, %c0_22] : memref<1x32xf32, #tpu.memory_space<vmem>>, vector<1x32xf32>
    %36 = vector.broadcast %35 : vector<1x32xf32> to vector<8x32xf32>
    %37 = arith.addf %34, %36 : vector<8x32xf32>
    %38 = arith.addf %1, %37 : vector<8x32xf32>
    %c0_23 = arith.constant 0 : index
    %c0_24 = arith.constant 0 : index
    %39 = vector.load %arg7[%c0_23, %c0_24] : memref<1x32xf32, #tpu.memory_space<vmem>>, vector<1x32xf32>
    %c0_25 = arith.constant 0 : index
    %c0_26 = arith.constant 0 : index
    %40 = vector.load %arg8[%c0_25, %c0_26] : memref<1x32xf32, #tpu.memory_space<vmem>>, vector<1x32xf32>
    %cst_27 = arith.constant dense<0.000000e+00> : vector<8xf32>
    %41 = vector.multi_reduction <add>, %38, %cst_27 [1] : vector<8x32xf32> to vector<8xf32>
    %42 = vector.shape_cast %41 : vector<8xf32> to vector<8x1xf32>
    %cst_28 = arith.constant 3.200000e+01 : f32
    %43 = vector.broadcast %cst_28 : f32 to vector<8x1xf32>
    %44 = arith.divf %42, %43 : vector<8x1xf32>
    %45 = vector.broadcast %44 : vector<8x1xf32> to vector<8x32xf32>
    %46 = arith.subf %38, %45 : vector<8x32xf32>
    %47 = arith.mulf %46, %46 : vector<8x32xf32>
    %cst_29 = arith.constant dense<0.000000e+00> : vector<8xf32>
    %48 = vector.multi_reduction <add>, %47, %cst_29 [1] : vector<8x32xf32> to vector<8xf32>
    %49 = vector.shape_cast %48 : vector<8xf32> to vector<8x1xf32>
    %cst_30 = arith.constant 3.200000e+01 : f32
    %50 = vector.broadcast %cst_30 : f32 to vector<8x1xf32>
    %51 = arith.divf %49, %50 : vector<8x1xf32>
    %52 = vector.broadcast %44 : vector<8x1xf32> to vector<8x32xf32>
    %53 = arith.subf %38, %52 : vector<8x32xf32>
    %cst_31 = arith.constant 9.99999974E-6 : f32
    %54 = vector.broadcast %cst_31 : f32 to vector<8x1xf32>
    %55 = arith.addf %51, %54 : vector<8x1xf32>
    %56 = math.rsqrt %55 : vector<8x1xf32>
    %57 = vector.broadcast %56 : vector<8x1xf32> to vector<8x32xf32>
    %58 = arith.mulf %53, %57 : vector<8x32xf32>
    %59 = vector.broadcast %39 : vector<1x32xf32> to vector<8x32xf32>
    %60 = arith.mulf %58, %59 : vector<8x32xf32>
    %61 = vector.broadcast %40 : vector<1x32xf32> to vector<8x32xf32>
    %62 = arith.addf %60, %61 : vector<8x32xf32>
    %63 = arith.truncf %62 : vector<8x32xf32> to vector<8x32xbf16>
    %c0_32 = arith.constant 0 : index
    %c0_33 = arith.constant 0 : index
    %64 = vector.load %arg9[%c0_32, %c0_33] : memref<32x64xbf16, #tpu.memory_space<vmem>>, vector<32x64xbf16>
    %cst_34 = arith.constant dense<0.000000e+00> : vector<8x64xf32>
    %65 = tpu.matmul %63, %64, %cst_34 {dimension_numbers = #tpu.dot_dimension_numbers<[1], [0], [0], [1], [0, 0, 1, 1], [], []>} : vector<8x32xbf16>, vector<32x64xbf16>, vector<8x64xf32> -> vector<8x64xf32>
    %66 = arith.addf %65, %11 : vector<8x64xf32>
    %c0_35 = arith.constant 0 : index
    %c0_36 = arith.constant 0 : index
    %67 = vector.load %arg11[%c0_35, %c0_36] : memref<1x64xf32, #tpu.memory_space<vmem>>, vector<1x64xf32>
    %68 = vector.broadcast %67 : vector<1x64xf32> to vector<8x64xf32>
    %69 = arith.addf %66, %68 : vector<8x64xf32>
    %cst_37 = arith.constant 0.000000e+00 : f32
    %70 = vector.broadcast %cst_37 : f32 to vector<8x64xf32>
    %71 = arith.maximumf %69, %70 : vector<8x64xf32>
    %72 = arith.truncf %71 : vector<8x64xf32> to vector<8x64xbf16>
    %c0_38 = arith.constant 0 : index
    %c0_39 = arith.constant 0 : index
    %73 = vector.load %arg12[%c0_38, %c0_39] : memref<64x32xbf16, #tpu.memory_space<vmem>>, vector<64x32xbf16>
    %cst_40 = arith.constant dense<0.000000e+00> : vector<8x32xf32>
    %74 = tpu.matmul %72, %73, %cst_40 {dimension_numbers = #tpu.dot_dimension_numbers<[1], [0], [0], [1], [0, 0, 1, 1], [], []>} : vector<8x64xbf16>, vector<64x32xbf16>, vector<8x32xf32> -> vector<8x32xf32>
    %c0_41 = arith.constant 0 : index
    %c0_42 = arith.constant 0 : index
    %75 = vector.load %arg13[%c0_41, %c0_42] : memref<1x32xf32, #tpu.memory_space<vmem>>, vector<1x32xf32>
    %76 = vector.broadcast %75 : vector<1x32xf32> to vector<8x32xf32>
    %77 = arith.addf %74, %76 : vector<8x32xf32>
    %78 = arith.addf %62, %77 : vector<8x32xf32>
    %c0_43 = arith.constant 0 : index
    %c0_44 = arith.constant 0 : index
    %79 = vector.load %arg14[%c0_43, %c0_44] : memref<1x32xf32, #tpu.memory_space<vmem>>, vector<1x32xf32>
    %c0_45 = arith.constant 0 : index
    %c0_46 = arith.constant 0 : index
    %80 = vector.load %arg15[%c0_45, %c0_46] : memref<1x32xf32, #tpu.memory_space<vmem>>, vector<1x32xf32>
    %cst_47 = arith.constant dense<0.000000e+00> : vector<8xf32>
    %81 = vector.multi_reduction <add>, %78, %cst_47 [1] : vector<8x32xf32> to vector<8xf32>
    %82 = vector.shape_cast %81 : vector<8xf32> to vector<8x1xf32>
    %cst_48 = arith.constant 3.200000e+01 : f32
    %83 = vector.broadcast %cst_48 : f32 to vector<8x1xf32>
    %84 = arith.divf %82, %83 : vector<8x1xf32>
    %85 = vector.broadcast %84 : vector<8x1xf32> to vector<8x32xf32>
    %86 = arith.subf %78, %85 : vector<8x32xf32>
    %87 = arith.mulf %86, %86 : vector<8x32xf32>
    %cst_49 = arith.constant dense<0.000000e+00> : vector<8xf32>
    %88 = vector.multi_reduction <add>, %87, %cst_49 [1] : vector<8x32xf32> to vector<8xf32>
    %89 = vector.shape_cast %88 : vector<8xf32> to vector<8x1xf32>
    %cst_50 = arith.constant 3.200000e+01 : f32
    %90 = vector.broadcast %cst_50 : f32 to vector<8x1xf32>
    %91 = arith.divf %89, %90 : vector<8x1xf32>
    %92 = vector.broadcast %84 : vector<8x1xf32> to vector<8x32xf32>
    %93 = arith.subf %78, %92 : vector<8x32xf32>
    %cst_51 = arith.constant 9.99999974E-6 : f32
    %94 = vector.broadcast %cst_51 : f32 to vector<8x1xf32>
    %95 = arith.addf %91, %94 : vector<8x1xf32>
    %96 = math.rsqrt %95 : vector<8x1xf32>
    %97 = vector.broadcast %96 : vector<8x1xf32> to vector<8x32xf32>
    %98 = arith.mulf %93, %97 : vector<8x32xf32>
    %99 = vector.broadcast %79 : vector<1x32xf32> to vector<8x32xf32>
    %100 = arith.mulf %98, %99 : vector<8x32xf32>
    %101 = vector.broadcast %80 : vector<1x32xf32> to vector<8x32xf32>
    %102 = arith.addf %100, %101 : vector<8x32xf32>
    %c0_52 = arith.constant 0 : index
    %c0_53 = arith.constant 0 : index
    %c0_54 = arith.constant 0 : index
    %103 = vector.load %arg16[%c0_52, %c0_53, %c0_54] : memref<1x8x32xf32, #tpu.memory_space<vmem>>, vector<1x8x32xf32>
    %104 = vector.shape_cast %103 : vector<1x8x32xf32> to vector<8x32xf32>
    %105 = vector.shape_cast %102 : vector<8x32xf32> to vector<1x8x32xf32>
    tpu.vector_store %arg16[%c0_52, %c0_53, %c0_54], %105 {strides = array<i32>} : memref<1x8x32xf32, #tpu.memory_space<vmem>>, vector<1x8x32xf32>,
    return
  }
  func.func @transform_0(%arg0: i32) -> (i32, i32, i32) {
    %c0_i32 = arith.constant 0 : i32
    %c0_i32_0 = arith.constant 0 : i32
    %c0_i32_1 = arith.constant 0 : i32
    return %arg0, %c0_i32, %c0_i32_0 : i32, i32, i32
  }
  func.func @transform_1(%arg0: i32) -> (i32, i32, i32) {
    %c0_i32 = arith.constant 0 : i32
    %c0_i32_0 = arith.constant 0 : i32
    %c0_i32_1 = arith.constant 0 : i32
    return %arg0, %c0_i32, %c0_i32_0 : i32, i32, i32
  }
  func.func @transform_2(%arg0: i32) -> (i32, i32) {
    %c0_i32 = arith.constant 0 : i32
    %c0_i32_0 = arith.constant 0 : i32
    %c0_i32_1 = arith.constant 0 : i32
    return %c0_i32, %c0_i32_0 : i32, i32
  }
  func.func @transform_3(%arg0: i32) -> (i32, i32) {
    %c0_i32 = arith.constant 0 : i32
    %c0_i32_0 = arith.constant 0 : i32
    %c0_i32_1 = arith.constant 0 : i32
    return %c0_i32, %c0_i32_0 : i32, i32
  }
  func.func @transform_4(%arg0: i32) -> (i32, i32, i32) {
    %c0_i32 = arith.constant 0 : i32
    %c0_i32_0 = arith.constant 0 : i32
    %c0_i32_1 = arith.constant 0 : i32
    %c0_i32_2 = arith.constant 0 : i32
    return %c0_i32, %c0_i32_0, %c0_i32_1 : i32, i32, i32
  }
  func.func @transform_5(%arg0: i32) -> (i32, i32) {
    %c0_i32 = arith.constant 0 : i32
    %c0_i32_0 = arith.constant 0 : i32
    %c0_i32_1 = arith.constant 0 : i32
    return %c0_i32, %c0_i32_0 : i32, i32
  }
  func.func @transform_6(%arg0: i32) -> (i32, i32) {
    %c0_i32 = arith.constant 0 : i32
    %c0_i32_0 = arith.constant 0 : i32
    %c0_i32_1 = arith.constant 0 : i32
    return %c0_i32, %c0_i32_0 : i32, i32
  }
  func.func @transform_7(%arg0: i32) -> (i32, i32) {
    %c0_i32 = arith.constant 0 : i32
    %c0_i32_0 = arith.constant 0 : i32
    %c0_i32_1 = arith.constant 0 : i32
    return %c0_i32, %c0_i32_0 : i32, i32
  }
  func.func @transform_8(%arg0: i32) -> (i32, i32) {
    %c0_i32 = arith.constant 0 : i32
    %c0_i32_0 = arith.constant 0 : i32
    %c0_i32_1 = arith.constant 0 : i32
    return %c0_i32, %c0_i32_0 : i32, i32
  }
  func.func @transform_9(%arg0: i32) -> (i32, i32) {
    %c0_i32 = arith.constant 0 : i32
    %c0_i32_0 = arith.constant 0 : i32
    %c0_i32_1 = arith.constant 0 : i32
    return %c0_i32, %c0_i32_0 : i32, i32
  }
  func.func @transform_10(%arg0: i32) -> (i32, i32) {
    %c0_i32 = arith.constant 0 : i32
    %c0_i32_0 = arith.constant 0 : i32
    %c0_i32_1 = arith.constant 0 : i32
    return %c0_i32, %c0_i32_0 : i32, i32
  }
  func.func @transform_11(%arg0: i32) -> (i32, i32) {
    %c0_i32 = arith.constant 0 : i32
    %c0_i32_0 = arith.constant 0 : i32
    %c0_i32_1 = arith.constant 0 : i32
    return %c0_i32, %c0_i32_0 : i32, i32
  }
  func.func @transform_12(%arg0: i32) -> (i32, i32) {
    %c0_i32 = arith.constant 0 : i32
    %c0_i32_0 = arith.constant 0 : i32
    %c0_i32_1 = arith.constant 0 : i32
    return %c0_i32, %c0_i32_0 : i32, i32
  }
  func.func @transform_13(%arg0: i32) -> (i32, i32) {
    %c0_i32 = arith.constant 0 : i32
    %c0_i32_0 = arith.constant 0 : i32
    %c0_i32_1 = arith.constant 0 : i32
    return %c0_i32, %c0_i32_0 : i32, i32
  }
  func.func @transform_14(%arg0: i32) -> (i32, i32) {
    %c0_i32 = arith.constant 0 : i32
    %c0_i32_0 = arith.constant 0 : i32
    %c0_i32_1 = arith.constant 0 : i32
    return %c0_i32, %c0_i32_0 : i32, i32
  }
  func.func @transform_15(%arg0: i32) -> (i32, i32, i32) {
    %c0_i32 = arith.constant 0 : i32
    %c0_i32_0 = arith.constant 0 : i32
    %c0_i32_1 = arith.constant 0 : i32
    return %arg0, %c0_i32, %c0_i32_0 : i32, i32, i32
  }
}

</mosaic_0001>

<bundles_post_ra>
// kernel: tpu_custom_call.1
= control target key start
LH: loop header
LB: loop body
LE: loop exit
PB: predicated region body
PF: predicated region fallthrough
CT: control target
= control target key end

     0   :  { %s3886_s0 = inlined_call_operand.vmem [shape: f32[2,8,32], index: 0, kind: input, shape index: {}]   ;;  %s3887_s1 = inlined_call_operand.vmem [shape: bf16[2,8,768], index: 1, kind: input, shape index: {}]   ;;  %s3888_s2 = inlined_call_operand.vmem [shape: bf16[32,96], index: 2, kind: input, shape index: {}]   ;;  %s3889_s3 = inlined_call_operand.vmem [shape: f32[1,96], index: 3, kind: input, shape index: {}]   ;;  %s3890_s4 = inlined_call_operand.vmem [shape: f32[4,8,32], index: 4, kind: input, shape index: {}]   ;;  %s3891_s5 = inlined_call_operand.vmem [shape: f32[1,32], index: 5, kind: input, shape index: {}]   ;;  %s3892_s6 = inlined_call_operand.vmem [shape: f32[1,32], index: 6, kind: input, shape index: {}]   ;;  %s3893_s7 = inlined_call_operand.vmem [shape: f32[1,32], index: 7, kind: input, shape index: {}]   ;;  %s3894_s8 = inlined_call_operand.vmem [shape: bf16[32,64], index: 8, kind: input, shape index: {}]   ;;  %s3895_s9 = inlined_call_operand.vmem [shape: bf16[768,64], index: 9, kind: input, shape index: {}]   ;;  %s3896_s10 = inlined_call_operand.vmem [shape: f32[1,64], index: 10, kind: input, shape index: {}]   ;;  %s3897_s11 = inlined_call_operand.vmem [shape: bf16[64,32], index: 11, kind: input, shape index: {}]   ;;  %s3898_s12 = inlined_call_operand.vmem [shape: f32[1,32], index: 12, kind: input, shape index: {}]   ;;  %s3899_s13 = inlined_call_operand.vmem [shape: f32[1,32], index: 13, kind: input, shape index: {}]   ;;  %s3900_s14 = inlined_call_operand.vmem [shape: f32[1,32], index: 14, kind: input, shape index: {}]   ;;  %s3901_s15 = inlined_call_operand.hbm [shape: f32[2,8,32], index: 15, kind: output, shape index: {}]  }
   0x1   :  { %3908 = sst [smem:[#allocation9_spill]] %s3886_s0 }
   0x2   :  { %3909 = sst [smem:[#allocation10_spill]] %s3888_s2 }
   0x3   :  { %3910 = sst [smem:[#allocation11_spill]] %s3889_s3 }
   0x4   :  { %20 = vsyncpa [#allocation3], 0 }
   0x5   :  { %22 = vsyncpa [#allocation3 + $0x1], 0  ;;  %s3383_s18 = smov 0   ;;  %s3385_s19 = smov 0  }
   0x6   :  { %s3387_s20 = smov 0   ;;  %s3389_s21 = smov 0  }
   0x7 LB: > { %3911 = sst [smem:[#allocation5_spill]] %s3287_s20  ;;  %s3404_s22 = sadd.s32 4294967295, %s3291_s21   ;;  %s3291_s21 = sphi %s3389_s21, %s3922_s21   ;;  %s3287_s20 = sphi %s3387_s20, %s3924_s20   ;;  %s3283_s19 = sphi %s3385_s19, %s3926_s19   ;;  %s3279_s18 = sphi %s3383_s18, %s3925_s18  }
   0x8   : > { %s2802_s23 = sadd.s32 4294967294, %s3291_s21   ;;  %s3408_s24 = sadd.s32 1, %s3291_s21  }
   0x9   : > { %3912 = sst [smem:[#allocation6_spill]] %s3408_s24  ;;  %s360_s25 = sadd.s32 1, %s3287_s20 }
   0xa   : > { %s357_s26 = ssub.s32 %s3291_s21, %s3408_s24  ;;  %p370_p0 = scmp.ne.s32.totalorder %s3287_s20, %s3283_s19 }
   0xb   : > { %p358_p1 = scmp.eq.s32.totalorder %s357_s26, 0  ;;  %p371_p2 = scmp.eq.s32.totalorder %s3404_s22, 1 }
   0xc   : > { %p376_p3 = scmp.ne.s32.totalorder %s3283_s19, %s3279_s18  ;;  %p377_p4 = scmp.eq.s32.totalorder %s2802_s23, 1 }
   0xd   : > { %s3419_s27 = scalar_select %p358_p1, %s3287_s20, %s360_s25  }
   0xe   : > { %p3421_p5 = por %p371_p2, %p370_p0  ;;  %p3425_p6 = por %p377_p4, %p376_p3 }
   0xf   : > { %3913 = sst [smem:[#allocation7_spill]] %s3419_s27  ;;  %p2805_p7 = scmp.ge.s32.totalorder %s3291_s21, 1 }
  0x10   : > { %s3915_s29 = scalar_select %p3425_p6, 1, 0 }
  0x11   : > { %p449_p8 = scmp.lt.s32.totalorder %s3291_s21, 3 }
  0x12   : > { %3916 = sst [smem:[#allocation8_spill]] %s3915_s29 }
  0x13   : > { %p450_p9 = pnand %p2805_p7, %p449_p8 }
  0x14   : > { %s3917_s2 = sld [smem:[#allocation10_spill]] (!%p450_p9)  ;;  %v3293_v1 = vmov (!%p450_p9), 0.0   ;;  %vm3294_vm0 = vmmov (!%p450_p9), 0   ;;  %p501_p10 = scmp.lt.s32.totalorder (!%p450_p9), %s3404_s22, 1  ;;  %vm539_vm1 = vcmask (!%p450_p9), 261120   ;;  %v3148_v11 = vld [vmem:[%s3895_s9 + $0x40] sm:$0xff] (!%p450_p9)  }
  0x15   : > { %453 = sbr.rel (%p450_p9) target bundleno = 2592 (0xa20), region = 80  ;;  %3009 = vmatprep.subr.bf16.mxu0 (!%p450_p9), %v3293_v1  ;;  %3013 = vmatprep.mubr.msk.bf16.mxu0 (!%p450_p9), %vm3294_vm0, %v3293_v1  ;;  %s3918_s0 = sld [smem:[#allocation9_spill]] (!%p450_p9)  ;;  %v3149_v12 = vld [vmem:[%s3895_s9] sm:$0xff] (!%p450_p9)   ;;  %v3150_v13 = vld [vmem:[%s3895_s9 + $0x48] sm:$0xff] (!%p450_p9)   ;;  %v3152_v15 = vld [vmem:[%s3895_s9 + $0x50] sm:$0xff] (!%p450_p9)   ;;  %vm1554_vm2 = vcmask (!%p450_p9), 64512  }
  0x16   : > { %s3919_s3 = sld [smem:[#allocation11_spill]] (!%p450_p9)  ;;  %2911 = vmatprep.subr.bf16.mxu1 (!%p450_p9), %v3148_v11  ;;  %s3905_s24 = smov (!%p450_p9), 96   ;;  %v3151_v14 = vld [vmem:[%s3895_s9 + $0x8] sm:$0xff] (!%p450_p9)   ;;  %v3162_v16 = vld [vmem:[%s3895_s9 + $0xc0] sm:$0xff] (!%p450_p9)   ;;  %v3153_v20 = vld [vmem:[%s3895_s9 + $0x10] sm:$0xff] (!%p450_p9)   ;;  %v1127_v11 = vlaneseq (!%p450_p9)  ;;  %vm2642_vm3 = vcmask (!%p450_p9), 523264  }
  0x17   : > { %2912 = vmatpush3.bf16.msra.mxu1 (!%p450_p9), %v3149_v12  ;;  %v3163_v17 = vld [vmem:[%s3895_s9 + $0x80] sm:$0xff] (!%p450_p9)   ;;  %v3166_v18 = vld [vmem:[%s3895_s9 + $0xc8] sm:$0xff] (!%p450_p9)   ;;  %v3154_v23 = vld [vmem:[%s3895_s9 + $0x58] sm:$0xff] (!%p450_p9)  }
  0x18   : > { %2913 = vmatprep.subr.bf16.mxu1 (!%p450_p9), %v3150_v13  ;;  %v3167_v21 = vld [vmem:[%s3895_s9 + $0x88] sm:$0xff] (!%p450_p9)   ;;  %v3171_v24 = vld [vmem:[%s3895_s9 + $0xd0] sm:$0xff] (!%p450_p9)   ;;  %v3155_v25 = vld [vmem:[%s3895_s9 + $0x18] sm:$0xff] (!%p450_p9)   ;;  %v1128_v13 = vshrl.u32 (!%p450_p9), %v1127_v11, 7 }
  0x19   : > { %v3173_v26 = vld [vmem:[%s3895_s9 + $0x90] sm:$0xff] (!%p450_p9)   ;;  %v3156_v27 = vld [vmem:[%s3895_s9 + $0x60] sm:$0xff] (!%p450_p9)   ;;  %v3175_v28 = vld [vmem:[%s3895_s9 + $0xd8] sm:$0xff] (!%p450_p9)  }
  0x1a   : > { %v3146_v0 = vld [vmem:[%s3917_s2] sm:$0xff] (!%p450_p9)   ;;  %v3147_v2 = vld [vmem:[%s3917_s2 + $0x8] sm:$0xff] (!%p450_p9)   ;;  %s3295_s2 = smov (!%p450_p9), 104   ;;  %v3177_v30 = vld [vmem:[%s3895_s9 + $0x98] sm:$0xff] (!%p450_p9)  }
  0x1b   : > { %3010 = vmatpush3.bf16.msra.mxu0 (!%p450_p9), %v3146_v0  ;;  %2914 = vmatpush3.bf16.msra.mxu1 (!%p450_p9), %v3151_v14  ;;  %v3157_v29 = vld [vmem:[%s3895_s9 + $0x20] sm:$0xff] (!%p450_p9)   ;;  %v3158_v31 = vld [vmem:[%s3895_s9 + $0x68] sm:$0xff] (!%p450_p9)   ;;  %v3160_v33 = vld [vmem:[%s3895_s9 + $0x70] sm:$0xff] (!%p450_p9)   ;;  %v3300_v14 = vmov (!%p450_p9), 1934713408  }
  0x1c   : > { %3011 = vmatprep.subr.bf16.mxu0 %v3293_v1  ;;  %s3443_s25 = scalar_select %p501_p10, %s3404_s22, 1  ;;  %v2809_v5 = vld [vmem:[%s3919_s3] ss:$0 sm:$0xff]  ;;  %2915 = vmatprep.subr.bf16.mxu1 %v3152_v15  ;;  %v3159_v32 = vld [vmem:[%s3895_s9 + $0x28] sm:$0xff]   ;;  %v3161_v34 = vld [vmem:[%s3895_s9 + $0x30] sm:$0xff]   ;;  %v1157_v15 = vunpack.c.l.s4 %v3300_v14 }
  0x1d   : > { %v3164_v35 = vld [vmem:[%s3895_s9 + $0x78] sm:$0xff]   ;;  %v3170_v37 = vld [vmem:[%s3895_s9 + $0x140] sm:$0xff]   ;;  %v3174_v40 = vld [vmem:[%s3895_s9 + $0x148] sm:$0xff]   ;;  %s2905_s3 = sshll.u32 %s3404_s22, 7  ;;  %s3302_s22 = smov [#allocation2]  }
  0x1e   : > { %s2807_s26 = sshll.u32 %s3443_s25, 3  ;;  %s3097_s17 = smul.u32 24, %s3443_s25  ;;  %v3165_v36 = vld [vmem:[%s3895_s9 + $0x38] sm:$0xff]   ;;  %v3172_v39 = vld [vmem:[%s3895_s9 + $0x100] sm:$0xff]   ;;  %v3176_v41 = vld [vmem:[%s3895_s9 + $0x108] sm:$0xff]  }
  0x1f   : > { %3012 = vmatpush3.bf16.msra.mxu0 %v3147_v2  ;;  %s3449_s27 = scalar_lea.vmem %s3918_s0, %s2807_s26  ;;  %s3296_s26 = smov 120   ;;  %2916 = vmatpush3.bf16.msra.mxu1 %v3153_v20  ;;  %v3178_v42 = vld [vmem:[%s3895_s9 + $0x150] sm:$0xff]   ;;  %v3179_v44 = vld [vmem:[%s3895_s9 + $0xe0] sm:$0xff]   ;;  %v3182_v45 = vld [vmem:[%s3895_s9 + $0x158] sm:$0xff]  }
  0x20   : > { %v511_v3 = vld [vmem:[%s3449_s27] sm:$0xff]  ;;  %s3479_s25 = scalar_lea.vmem %s3887_s1, %s3097_s17  ;;  %2933 = vmatprep.subr.bf16.mxu0 %v3162_v16  ;;  %2917 = vmatprep.subr.bf16.mxu1 %v3154_v23  ;;  %v3180_v43 = vld [vmem:[%s3895_s9 + $0x110] sm:$0xff]   ;;  %v3184_v47 = vld [vmem:[%s3895_s9 + $0x118] sm:$0xff]   ;;  %s3920_s0 = smov 96  }
  0x21   : > { %v515_v4 = vpack.c.bf16 %v511_v3, %v511_v3  ;;  %v512_v19 = vld [vmem:[%s3479_s25] sm:$0xff]  ;;  %v3183_v48 = vld [vmem:[%s3895_s9 + $0xe8] sm:$0xff]   ;;  %v3187_v52 = vld [vmem:[%s3895_s9 + $0xf0] sm:$0xff]   ;;  %s3843_s16 = scalar_lea.hbm %s3901_s15, %s2905_s3 }
  0x22   : > { %v2814_v22 = vcombine.high %v512_v19, %v512_v19  ;;  %v2813_v38 = vcombine.low %v512_v19, %v512_v19  ;;  %v3181_v46 = vld [vmem:[%s3895_s9 + $0xa0] sm:$0xff]   ;;  %v3185_v50 = vld [vmem:[%s3895_s9 + $0xa8] sm:$0xff]   ;;  %v3189_v54 = vld [vmem:[%s3895_s9 + $0xb0] sm:$0xff]  }
  0x23   : > { %3014 = vmatmul.mubr.msk.bf16.vlgmr.msra.gmra.mrb[0].mxu0 %vm539_vm1, %v515_v4  ;;  %2918 = vmatpush3.bf16.msra.mxu1 %v3155_v25  ;;  %v3186_v49 = vld [vmem:[%s3895_s9 + $0x160] sm:$0xff]   ;;  %v3190_v53 = vld [vmem:[%s3895_s9 + $0x168] sm:$0xff]   ;;  %v3191_v56 = vld [vmem:[%s3895_s9 + $0xf8] sm:$0xff]  }
  0x24   : > { %2934 = vmatpush3.bf16.msra.mxu0 %v3163_v17  ;;  %1020 = vmatprep.mubr.bf16.mxu1 %v2814_v22  ;;  %v3188_v51 = vld [vmem:[%s3895_s9 + $0x120] sm:$0xff]   ;;  %v3192_v55 = vld [vmem:[%s3895_s9 + $0x128] sm:$0xff]   ;;  %v3194_v57 = vld [vmem:[%s3895_s9 + $0x170] sm:$0xff]  }
  0x25   : > { %2935 = vmatprep.subr.bf16.mxu0 %v3166_v18  ;;  %2919 = vmatprep.subr.bf16.mxu1 %v3156_v27  ;;  %v3193_v58 = vld [vmem:[%s3895_s9 + $0xb8] sm:$0xff]   ;;  %v3197_v59 = vld [vmem:[%s3895_s9 + $0x130] sm:$0xff]   ;;  %v513_v60 = vld [vmem:[%s3479_s25 + $0x8] sm:$0xff] }
  0x26   : > { %v2816_v61 = vcombine.high %v513_v60, %v513_v60  ;;  %v2815_v63 = vcombine.low %v513_v60, %v513_v60  ;;  %v3198_v0 = vld [vmem:[%s3895_s9 + $0x178] sm:$0xff]   ;;  %v514_v3 = vld [vmem:[%s3479_s25 + $0x10] sm:$0xff]  ;;  %s3301_s25 = smov 64  }
  0x27   : > { %2920 = vmatpush3.bf16.msra.mxu1 %v3157_v29  ;;  %v3199_v2 = vld [vmem:[%s3895_s9 + $0x138] sm:$0xff]   ;;  %v2818_v4 = vcombine.high %v514_v3, %v514_v3 }
  0x28   : > { %2936 = vmatpush3.bf16.msra.mxu0 %v3167_v21  ;;  %2921 = vmatprep.subr.bf16.mxu1 %v3158_v31  ;;  %v1158_v21 = vunpack.c.0.s8 %v1157_v15 }
  0x29   : > { %2937 = vmatprep.subr.bf16.mxu0 %v3171_v24  ;;  %1060 = vmatprep.mubr.bf16.mxu0 %v2816_v61 }
  0x2b   : > { %2922 = vmatpush3.bf16.msra.mxu1 %v3159_v32 }
  0x2c   : > { %2938 = vmatpush3.bf16.msra.mxu0 %v3173_v26  ;;  %2923 = vmatprep.subr.bf16.mxu1 %v3160_v33  ;;  %v3648_v26 = vsub.s32 %v1158_v21, %v1128_v13 }
  0x2d   : > { %2939 = vmatprep.subr.bf16.mxu0 %v3175_v28 }
  0x2f   : > { %2924 = vmatpush3.bf16.msra.mxu1 %v3161_v34 }
  0x30   : > { %2940 = vmatpush3.bf16.msra.mxu0 %v3177_v30  ;;  %2925 = vmatprep.subr.bf16.mxu1 %v3164_v35 }
  0x31   : > { %2941 = vmatprep.subr.bf16.mxu0 %v3179_v44 }
  0x33   : > { %2926 = vmatpush3.bf16.msra.mxu1 %v3165_v36 }
  0x34   : > { %2955 = vmatprep.subr.bf16.mxu1 %v3170_v37  ;;  %2942 = vmatpush3.bf16.msra.mxu0 %v3181_v46 }
  0x35   : > { %2943 = vmatprep.subr.bf16.mxu0 %v3183_v48 }
  0x36   : > { %1021 = vmatmul.mubr.bf16.vlgmr.msra.gmra.mrb[0].mxu1 %v2813_v38 }
  0x37   : > { %2956 = vmatpush3.bf16.msra.mxu1 %v3172_v39  ;;  %1100 = vmatprep.mubr.bf16.mxu1 %v2818_v4 }
  0x38   : > { %2957 = vmatprep.subr.bf16.mxu1 %v3174_v40  ;;  %2944 = vmatpush3.bf16.msra.mxu0 %v3185_v50 }
  0x39   : > { %2945 = vmatprep.subr.bf16.mxu0 %v3187_v52 }
  0x3b   : > { %2958 = vmatpush3.bf16.msra.mxu1 %v3176_v41 }
  0x3c   : > { %2959 = vmatprep.subr.bf16.mxu1 %v3178_v42  ;;  %2946 = vmatpush3.bf16.msra.mxu0 %v3189_v54 }
  0x3d   : > { %2947 = vmatprep.subr.bf16.mxu0 %v3191_v56 }
  0x3f   : > { %2960 = vmatpush3.bf16.msra.mxu1 %v3180_v43 }
  0x40   : > { %2961 = vmatprep.subr.bf16.mxu1 %v3182_v45  ;;  %2948 = vmatpush3.bf16.msra.mxu0 %v3193_v58 }
  0x41   : > { %3017 = vmatprep.subr.mxu0 %v3293_v1 }
  0x43   : > { %2962 = vmatpush3.bf16.msra.mxu1 %v3184_v47  ;;  %1061 = vmatmul.mubr.bf16.vlgmr.msra.gmra.mrb[4].mxu0 %v2815_v63 }
  0x44   : > { %2963 = vmatprep.subr.bf16.mxu1 %v3186_v49  ;;  %3019 = vmatprep.mubr.msk.f32.mxu0 %vm3294_vm0, %v3293_v1 }
  0x47   : > { %2964 = vmatpush3.bf16.msra.mxu1 %v3188_v51 }
  0x48   : > { %2965 = vmatprep.subr.bf16.mxu1 %v3190_v53 }
  0x4b   : > { %2966 = vmatpush3.bf16.msra.mxu1 %v3192_v55 }
  0x4c   : > { %2967 = vmatprep.subr.bf16.mxu1 %v3194_v57 }
  0x4f   : > { %2968 = vmatpush3.bf16.msra.mxu1 %v3197_v59 }
  0x50   : > { %2969 = vmatprep.subr.bf16.mxu1 %v3198_v0 }
  0x53   : > { %2970 = vmatpush3.bf16.msra.mxu1 %v3199_v2 }
  0x54   : > { %3062 = vmatprep.subr.mxu1 %v3293_v1 }
  0xf6   : > { %v577_v6 = vpop.f32.mrb[0].mxu0 }
  0xf7   : > { %v3456_v7 = vadd.f32 %v2809_v5, %v577_v6  ;;  %v3015_v8 = vpop.f32.mrb[1].mxu0 }
  0xf8   : > { %v580_v9 = vpop.f32.mrb[2].mxu0  ;;  %v2817_v8 = vcombine.low %v514_v3, %v514_v3 }
  0xf9   : > { %1119 = vrot.lane.b32.xlu1 %v3456_v7, %s3295_s2  ;;  %1113 = vrot.lane.b32.xlu0 %v3456_v7, %s3296_s26  ;;  %v3016_v10 = vpop.f32.mrb[3].mxu0  ;;  %s3298_s2 = smov 112   ;;  %v3299_v9 = vmov 1983009808  }
  0xfa   : > { %1101 = vmatmul.mubr.bf16.vlgmr.msra.gmra.mrb[4].mxu1 %v2817_v8  ;;  %v1125_v10 = vunpack.c.l.s4 %v3299_v9 }
  0xfb   : > { %3064 = vmatprep.mubr.msk.f32.mxu1 %vm3294_vm0, %v3293_v1 }
  0xfc   : > { %v1126_v12 = vunpack.c.0.s8 %v1125_v10 }
  0xfd   : > { %1258 = vrot.lane.b32.xlu1 %v3456_v7, %s3905_s24  ;;  %1116 = vrot.lane.b32.xlu0 %v3456_v7, %s3298_s2  ;;  %s498_s2 = sand.u32 1, %s3283_s19  }
  0xfe   : > { %v3638_v18 = vsub.s32 %v1126_v12, %v1128_v13  ;;  %s2806_s26 = sshll.u32 %s498_s2, 3  ;;  %s2718_s23 = scalar_lea.sflag [#allocation3], %s498_s2 }
 0x16b   : > { %v3609_v62 = vpop.permute.xlu0 %1113  ;;  %v3623_v5 = vpop.permute.xlu1 %1119 }
 0x16c   : > { %1260 = vrot.lane.b32.xlu0 %v3609_v62, %s3920_s0  ;;  %v1138_v19 = vcombine.low %v3609_v62, %v3623_v5  ;;  %v1139_v20 = vcombine.high %v3609_v62, %v3623_v5 }
 0x16e   : > { %v1146_v24 = vrot.slane %v1138_v19, %v3638_v18  ;;  %v1153_v25 = vrot.slane %v1139_v20, %v3638_v18 }
 0x16f   : > { %v3625_v6 = vpop.permute.xlu0 %1116  ;;  %v1259_v27 = vpop.permute.xlu1 %1258 }
 0x170   : > { %1264 = vrot.lane.b32.xlu0 %v3623_v5, %s3920_s0  ;;  %1262 = vrot.lane.b32.xlu1 %v3625_v6, %s3920_s0  ;;  %v1122_v16 = vcombine.low %v3456_v7, %v3625_v6  ;;  %v1123_v17 = vcombine.high %v3456_v7, %v3625_v6 }
 0x172   : > { %v1130_v22 = vrot.slane %v1122_v16, %v3638_v18  ;;  %v1137_v23 = vrot.slane %v1123_v17, %v3638_v18  ;;  %v2927_v16 = vpop.f32.mrb[0].mxu1 }
 0x173   : > { %v2928_v20 = vpop.f32.mrb[1].mxu1 }
 0x174   : > { %v1154_v28 = vcombine.low %v1130_v22, %v1146_v24  ;;  %v1155_v29 = vcombine.high %v1130_v22, %v1146_v24  ;;  %v1170_v30 = vcombine.low %v1137_v23, %v1153_v25  ;;  %v1171_v31 = vcombine.high %v1137_v23, %v1153_v25  ;;  %v2930_v24 = vpop.f32.mrb[2].mxu1 }
 0x175   : > { %v2929_v23 = vadd.f32 %v2928_v20, %v2927_v16 }
 0x176   : > { %v1162_v33 = vrot.slane %v1154_v28, %v3648_v26  ;;  %v1169_v34 = vrot.slane %v1155_v29, %v3648_v26  ;;  %v1178_v35 = vrot.slane %v1170_v30, %v3648_v26  ;;  %v1185_v36 = vrot.slane %v1171_v31, %v3648_v26  ;;  %v2931_v29 = vpop.f32.mrb[3].mxu1 }
 0x178   : > { %v1190_v47 = vcombine.low %v1162_v33, %v1169_v34  ;;  %v2867_v48 = vcombine.high %v1162_v33, %v1169_v34  ;;  %v1206_v49 = vcombine.low %v1178_v35, %v1185_v36  ;;  %v2868_v50 = vcombine.high %v1178_v35, %v1185_v36 }
 0x17a   : > { %v1197_v59 = vrot.slane %v1190_v47, %v3638_v18  ;;  %v1205_v60 = vrot.slane %v2867_v48, %v3638_v18  ;;  %v1213_v61 = vrot.slane %v1206_v49, %v3638_v18  ;;  %v1221_v63 = vrot.slane %v2868_v50, %v3638_v18 }
 0x17c   : > { %v1222_v12 = vcombine.low %v1197_v59, %v1205_v60  ;;  %v1238_v13 = vcombine.low %v1213_v61, %v1221_v63  ;;  %v1223_v31 = vcombine.high %v1197_v59, %v1205_v60 }
 0x17e   : > { %v1230_v21 = vrot.slane %v1222_v12, %v3648_v26  ;;  %v1246_v22 = vrot.slane %v1238_v13, %v3648_v26 }
 0x180   : > { %v1254_v30 = vcombine.low %v1230_v21, %v1246_v22  ;;  %v1255_v36 = vcombine.high %v1230_v21, %v1246_v22 }
 0x1cd   : > { %v2971_v49 = vpop.f32.mrb[4].mxu1 }
 0x1ce   : > { %v2972_v50 = vpop.f32.mrb[5].mxu1 }
 0x1de   : > { %v1261_v32 = vpop.permute.xlu0 %1260 }
 0x1e2   : > { %v1263_v37 = vpop.permute.xlu1 %1262  ;;  %v1265_v38 = vpop.permute.xlu0 %1264 }
 0x1e3   : > { %v1270_v39 = vcombine.low %v1259_v27, %v1263_v37  ;;  %v1271_v40 = vcombine.high %v1259_v27, %v1263_v37  ;;  %v1286_v41 = vcombine.low %v1261_v32, %v1265_v38  ;;  %v1287_v42 = vcombine.high %v1261_v32, %v1265_v38 }
 0x1e4   : > { %v1239_v32 = vcombine.high %v1213_v61, %v1221_v63  ;;  %v1237_v37 = vrot.slane %v1223_v31, %v3648_v26 }
 0x1e5   : > { %v1278_v43 = vrot.slane %v1270_v39, %v3638_v18  ;;  %v1285_v44 = vrot.slane %v1271_v40, %v3638_v18  ;;  %v1294_v45 = vrot.slane %v1286_v41, %v3638_v18  ;;  %v1301_v46 = vrot.slane %v1287_v42, %v3638_v18 }
 0x1e6   : > { %v1253_v38 = vrot.slane %v1239_v32, %v3648_v26 }
 0x1e7   : > { %v1302_v51 = vcombine.low %v1278_v43, %v1294_v45  ;;  %v1303_v52 = vcombine.high %v1278_v43, %v1294_v45  ;;  %v1318_v53 = vcombine.low %v1285_v44, %v1301_v46  ;;  %v1319_v54 = vcombine.high %v1285_v44, %v1301_v46  ;;  %v2949_v43 = vpop.f32.mrb[4].mxu0 }
 0x1e8   : > { %v1256_v40 = vcombine.low %v1237_v37, %v1253_v38  ;;  %v1257_v42 = vcombine.high %v1237_v37, %v1253_v38  ;;  %v2950_v44 = vpop.f32.mrb[5].mxu0 }
 0x1e9   : > { %v1310_v55 = vrot.slane %v1302_v51, %v3648_v26  ;;  %v1317_v56 = vrot.slane %v1303_v52, %v3648_v26  ;;  %v1326_v57 = vrot.slane %v1318_v53, %v3648_v26  ;;  %v1333_v58 = vrot.slane %v1319_v54, %v3648_v26  ;;  %v2952_v46 = vpop.f32.mrb[6].mxu0  ;;  %v2974_v52 = vpop.f32.mrb[6].mxu1 }
 0x1ea   : > { %v2951_v45 = vadd.f32 %v2950_v44, %v2949_v43  ;;  %v2953_v47 = vpop.f32.mrb[7].mxu0  ;;  %v2973_v51 = vadd.f32 %v2972_v50, %v2971_v49  ;;  %v2975_v53 = vpop.f32.mrb[7].mxu1 }
 0x1eb   : > { %v1338_v0 = vcombine.low %v1310_v55, %v1317_v56  ;;  %v2869_v2 = vcombine.high %v1310_v55, %v1317_v56  ;;  %v1354_v3 = vcombine.low %v1326_v57, %v1333_v58  ;;  %v2870_v4 = vcombine.high %v1326_v57, %v1333_v58 }
 0x1ec   : > { %v1063_v48 = vadd.f32 %v2951_v45, %v2929_v23 }
 0x1ed   : > { %v1345_v8 = vrot.slane %v1338_v0, %v3638_v18  ;;  %v1353_v9 = vrot.slane %v2869_v2, %v3638_v18  ;;  %v1361_v10 = vrot.slane %v1354_v3, %v3638_v18  ;;  %v1369_v11 = vrot.slane %v2870_v4, %v3638_v18 }
 0x1ee   : > { %v3698_v54 = vadd.f32 %v2973_v51, %v1063_v48 }
 0x1ef   : > { %v1370_v14 = vcombine.low %v1345_v8, %v1353_v9  ;;  %v1386_v15 = vcombine.low %v1361_v10, %v1369_v11  ;;  %v1371_v25 = vcombine.high %v1345_v8, %v1353_v9  ;;  %v1387_v27 = vcombine.high %v1361_v10, %v1369_v11 }
 0x1f1   : > { %v1378_v17 = vrot.slane %v1370_v14, %v3648_v26  ;;  %v1394_v19 = vrot.slane %v1386_v15, %v3648_v26  ;;  %v1385_v34 = vrot.slane %v1371_v25, %v3648_v26  ;;  %v1401_v35 = vrot.slane %v1387_v27, %v3648_v26 }
 0x1f3   : > { %v1402_v28 = vcombine.low %v1378_v17, %v1394_v19  ;;  %v1403_v33 = vcombine.high %v1378_v17, %v1394_v19  ;;  %v1404_v39 = vcombine.low %v1385_v34, %v1401_v35  ;;  %v1405_v41 = vcombine.high %v1385_v34, %v1401_v35 }
 0x1f5   : > { %3018 = vmatpush3.xpose.msk.msra.mxu0 %vm1554_vm2, %v1402_v28 }
 0x1f6   : > { %3022 = vmatprep.subr.mxu0 %v3293_v1 }
 0x1f8   : > { %3020 = vmatmul.mubr.msk.f32.vlgmr.msra.gmra.mrb[8].mxu0 %vm1554_vm2, %v1254_v30 }
 0x1f9   : > { %3023 = vmatpush3.xpose.msk.msra.mxu0 %vm1554_vm2, %v1403_v33  ;;  %3024 = vmatprep.mubr.msk.f32.mxu0 %vm3294_vm0, %v3293_v1 }
 0x1fa   : > { %3027 = vmatprep.subr.mxu0 %v3293_v1 }
 0x1fc   : > { %3025 = vmatmul.mubr.msk.f32.vlgmr.msra.gmra.mrb[10].mxu0 %vm1554_vm2, %v1255_v36 }
 0x1fd   : > { %3028 = vmatpush3.xpose.msk.msra.mxu0 %vm1554_vm2, %v1404_v39  ;;  %3029 = vmatprep.mubr.msk.f32.mxu0 %vm3294_vm0, %v3293_v1 }
 0x1fe   : > { %3032 = vmatprep.subr.mxu0 %v3293_v1 }
 0x200   : > { %3030 = vmatmul.mubr.msk.f32.vlgmr.msra.gmra.mrb[12].mxu0 %vm1554_vm2, %v1256_v40 }
 0x201   : > { %3033 = vmatpush3.xpose.msk.msra.mxu0 %vm1554_vm2, %v1405_v41  ;;  %3034 = vmatprep.mubr.msk.f32.mxu0 %vm3294_vm0, %v3293_v1 }
 0x202   : > { %3037 = vmatprep.subr.mxu0 %v3293_v1 }
 0x204   : > { %3035 = vmatmul.mubr.msk.f32.vlgmr.msra.gmra.mrb[14].mxu0 %vm1554_vm2, %v1257_v42 }
 0x205   : > { %3039 = vmatprep.mubr.msk.f32.mxu0 %vm3294_vm0, %v3293_v1 }
 0x2cb   : > { %v1627_v55 = vpop.f32.mrb[8].mxu0 }
 0x2cc   : > { %v3021_v56 = vpop.f32.mrb[9].mxu0  ;;  %v1859_v57 = vsel %vm1554_vm2, %v1627_v55, -inf }
 0x2cd   : > { %1860 = vmax.xlane.f32.xlu1 %v1859_v57 }
 0x2cf   : > { %v1703_v58 = vpop.f32.mrb[10].mxu0 }
 0x2d0   : > { %v3026_v59 = vpop.f32.mrb[11].mxu0  ;;  %v1862_v60 = vsel %vm1554_vm2, %v1703_v58, -inf }
 0x2d1   : > { %1863 = vmax.xlane.f32.xlu0 %v1862_v60 }
 0x2d3   : > { %v1779_v61 = vpop.f32.mrb[12].mxu0 }
 0x2d4   : > { %v3031_v63 = vpop.f32.mrb[13].mxu0  ;;  %v1865_v0 = vsel %vm1554_vm2, %v1779_v61, -inf }
 0x2d5   : > { %1866 = vmax.xlane.f32.xlu0 %v1865_v0 }
 0x2d7   : > { %v1855_v2 = vpop.f32.mrb[14].mxu0 }
 0x2d8   : > { %v3036_v3 = vpop.f32.mrb[15].mxu0  ;;  %v1868_v4 = vsel %vm1554_vm2, %v1855_v2, -inf }
 0x2d9   : > { %1869 = vmax.xlane.f32.xlu1 %v1868_v4 }
 0x2ea   : > { %1408 = vrot.lane.b32.xlu1 %v3609_v62, %s3301_s25 }
 0x2eb   : > { %1406 = vrot.lane.b32.xlu0 %v3456_v7, %s3301_s25 }
 0x2ee   : > { %1410 = vrot.lane.b32.xlu1 %v3625_v6, %s3301_s25 }
 0x35a   : > { %v1861_v8 = vpop.xlane.xlu1 %1860 }
 0x35b   : > { %v1871_v9 = vsub.f32 %v1627_v55, %v1861_v8 }
 0x35d   : > { %v1875_v10 = vmul.f32 1.442695, %v1871_v9 }
 0x35e   : > { %v1864_v11 = vpop.xlane.xlu0 %1863 }
 0x35f   : > { %3208 = vpow2.f32 %v1875_v10  ;;  %v1872_v12 = vsub.f32 %v1703_v58, %v1864_v11 }
 0x361   : > { %v1877_v13 = vmul.f32 1.442695, %v1872_v12 }
 0x362   : > { %v1867_v14 = vpop.xlane.xlu0 %1866 }
 0x363   : > { %3210 = vpow2.f32 %v1877_v13  ;;  %v1873_v15 = vsub.f32 %v1779_v61, %v1867_v14 }
 0x365   : > { %v1879_v16 = vmul.f32 1.442695, %v1873_v15 }
 0x366   : > { %v1870_v21 = vpop.xlane.xlu1 %1869  ;;  %v1407_v28 = vpop.permute.xlu0 %1406 }
 0x367   : > { %3212 = vpow2.f32 %v1879_v16  ;;  %v1874_v22 = vsub.f32 %v1855_v2, %v1870_v21  ;;  %v1111_v21 = vld [vmem:[%s3890_s4 + $0x18] sm:$0xff] }
 0x369   : > { %v3209_v17 = vpop.eup %3208  ;;  %v1881_v23 = vmul.f32 1.442695, %v1874_v22 }
 0x36a   : > { %v1883_v19 = vsel %vm1554_vm2, %v3209_v17, 0.0  ;;  %v1409_v27 = vpop.permute.xlu1 %1408 }
 0x36b   : > { %1884 = vadd.xlane.f32.xlu0 %v1883_v19  ;;  %3214 = vpow2.f32 %v1881_v23  ;;  %v1108_v19 = vld [vmem:[%s3890_s4] sm:$0xff] }
 0x36d   : > { %v3708_v62 = vpop.eup %3210 }
 0x36e   : > { %v1886_v7 = vsel %vm1554_vm2, %v3708_v62, 0.0  ;;  %v1411_v29 = vpop.permute.xlu1 %1410 }
 0x36f   : > { %1887 = vadd.xlane.f32.xlu1 %v1886_v7  ;;  %v1418_v31 = vcombine.low %v1407_v28, %v1411_v29  ;;  %v1419_v32 = vcombine.high %v1407_v28, %v1411_v29  ;;  %v1110_v7 = vld [vmem:[%s3890_s4 + $0x10] sm:$0xff] }
 0x371   : > { %v3712_v6 = vpop.eup %3212  ;;  %v1433_v36 = vrot.slane %v1419_v32, %v3638_v18 }
 0x372   : > { %v1889_v20 = vsel %vm1554_vm2, %v3712_v6, 0.0 }
 0x373   : > { %1890 = vadd.xlane.f32.xlu1 %v1889_v20 }
 0x375   : > { %v3717_v24 = vpop.eup %3214 }
 0x376   : > { %v1892_v25 = vsel %vm1554_vm2, %v3717_v24, 0.0 }
 0x381   : > { %1412 = vrot.lane.b32.xlu0 %v3623_v5, %s3301_s25  ;;  %v1426_v5 = vrot.slane %v1418_v31, %v3638_v18  ;;  %s500_s25 = scalar_lea.vmem [#allocation2], %s2806_s26  ;;  %s3233_s26 = sshll.u32 %s3302_s22, 4  ;;  %s3234_s26 = int_to_ptr.vmem [resolvable:$false] %s3233_s26 }
 0x382   : > { %s2731_s24 = sshll.u32 %s500_s25, 4  ;;  %s3235_s17 = scalar_lea.vmem %s3234_s26, 256  ;;  %s3845_s24 = int_to_ptr.vmem [resolvable:$true] %s2731_s24 }
 0x383   : > { %s3229_s30 = scalar_lea.vmem %s3845_s24, 128  ;;  %p3236_p0 = scmp.lt.s32.totalorder %s3845_s24, %s3234_s26 }
 0x384   : > { %p3230_p11 = scmp.ne.s32.totalorder %s3845_s24, %s3229_s30  ;;  %p3237_p1 = scmp.lt.s32.totalorder %s3235_s17, %s3229_s30 }
 0x386   : > { %p3231_p12 = pnand %p3230_p11, %p3421_p5  ;;  %p3238_p2 = por %p3237_p1, %p3236_p0 }
 0x388   : > { %p3232_p13 = pneg %p3231_p12 }
 0x38a   : > { %p3239_p3 = pnand %p3238_p2, %p3232_p13 }
 0x3a0   : > { %1893 = vadd.xlane.f32.xlu0 %v1892_v25 }
 0x3f8   : > { %v1885_v30 = vpop.xlane.xlu0 %1884 }
 0x3f9   : > { %3216 = vrcp.f32 %v1885_v30 }
 0x3fc   : > { %v1413_v33 = vpop.permute.xlu0 %1412  ;;  %v1888_v39 = vpop.xlane.xlu1 %1887 }
 0x3fd   : > { %v1434_v34 = vcombine.low %v1409_v27, %v1413_v33  ;;  %v1435_v35 = vcombine.high %v1409_v27, %v1413_v33  ;;  %3218 = vrcp.f32 %v1888_v39 }
 0x3ff   : > { %v1442_v37 = vrot.slane %v1434_v34, %v3638_v18  ;;  %v1449_v38 = vrot.slane %v1435_v35, %v3638_v18 }
 0x400   : > { %v1891_v52 = vpop.xlane.xlu1 %1890 }
 0x401   : > { %v1450_v40 = vcombine.low %v1426_v5, %v1442_v37  ;;  %v1451_v41 = vcombine.high %v1426_v5, %v1442_v37  ;;  %v1466_v42 = vcombine.low %v1433_v36, %v1449_v38  ;;  %v1467_v43 = vcombine.high %v1433_v36, %v1449_v38 }
 0x402   : > { %3220 = vrcp.f32 %v1891_v52 }
 0x403   : > { %v1458_v44 = vrot.slane %v1450_v40, %v3648_v26  ;;  %v1465_v45 = vrot.slane %v1451_v41, %v3648_v26  ;;  %v1474_v46 = vrot.slane %v1466_v42, %v3648_v26  ;;  %v1481_v47 = vrot.slane %v1467_v43, %v3648_v26  ;;  %v3217_v60 = vpop.eup %3216  ;;  %v2889_v41 = vld [vmem:[%s3891_s5] ss:$0 sm:$0xff] }
 0x404   : > { %v1896_v8 = vmul.f32 %v3217_v60, %v3209_v17 }
 0x405   : > { %v1486_v48 = vcombine.low %v1458_v44, %v1465_v45  ;;  %v2871_v49 = vcombine.high %v1458_v44, %v1465_v45  ;;  %v1502_v50 = vcombine.low %v1474_v46, %v1481_v47  ;;  %v2872_v51 = vcombine.high %v1474_v46, %v1481_v47  ;;  %v3228_v45 = vld [vmem:[%s3449_s27] sm:$0xff] }
 0x407   : > { %v1493_v53 = vrot.slane %v1486_v48, %v3638_v18  ;;  %v1501_v55 = vrot.slane %v2871_v49, %v3638_v18  ;;  %v1509_v56 = vrot.slane %v1502_v50, %v3638_v18  ;;  %v1517_v57 = vrot.slane %v2872_v51, %v3638_v18  ;;  %v3219_v4 = vpop.eup %3218 }
 0x408   : > { %v1898_v18 = vmul.f32 %v3219_v4, %v3708_v62  ;;  %v1109_v62 = vld [vmem:[%s3890_s4 + $0x8] sm:$0xff] }
 0x409   : > { %v1518_v58 = vcombine.low %v1493_v53, %v1501_v55  ;;  %v1534_v59 = vcombine.low %v1509_v56, %v1517_v57  ;;  %v1519_v0 = vcombine.high %v1493_v53, %v1501_v55  ;;  %v1535_v2 = vcombine.high %v1509_v56, %v1517_v57  ;;  %3063 = vmatpush3.msra.mxu1 %v1109_v62  ;;  %v3202_v53 = vld [vmem:[%s3894_s8] sm:$0xff]   ;;  %v3203_v55 = vld [vmem:[%s3894_s8 + $0x8] sm:$0xff]  }
 0x40a   : > { %3072 = vmatprep.subr.mxu1 %v3293_v1  ;;  %v3204_v56 = vld [vmem:[%s3897_s11] sm:$0xff]   ;;  %v3205_v57 = vld [vmem:[%s3897_s11 + $0x8] sm:$0xff]  }
 0x40b   : > { %v1526_v61 = vrot.slane %v1518_v58, %v3648_v26  ;;  %v1542_v63 = vrot.slane %v1534_v59, %v3648_v26  ;;  %v1533_v10 = vrot.slane %v1519_v0, %v3648_v26  ;;  %v1549_v11 = vrot.slane %v1535_v2, %v3648_v26  ;;  %v2891_v2 = vld [vmem:[%s3893_s7] ss:$0 sm:$0xff] }
 0x40c   : > { %v3221_v12 = vpop.eup %3220 }
 0x40d   : > { %v1550_v3 = vcombine.low %v1526_v61, %v1542_v63  ;;  %v1551_v9 = vcombine.high %v1526_v61, %v1542_v63  ;;  %v1552_v13 = vcombine.low %v1533_v10, %v1549_v11  ;;  %v1900_v26 = vmul.f32 %v3221_v12, %v3712_v6  ;;  %v2890_v63 = vld [vmem:[%s3892_s6] ss:$0 sm:$0xff] }
 0x40e   : > { %v1553_v14 = vcombine.high %v1533_v10, %v1549_v11  ;;  %v3207_v10 = vld [vmem:[%s3897_s11 + $0x18] sm:$0xff]  }
 0x40f   : > { %3038 = vmatpush3.msra.mxu0 %v1550_v3 }
 0x410   : > { %3040 = vmatmul.mubr.msk.f32.vlgmr.msra.gmra.mrb[16].mxu0 %vm1554_vm2, %v1896_v8  ;;  %3042 = vmatprep.subr.mxu0 %v3293_v1 }
 0x411   : > { %3043 = vmatpush3.msra.mxu0 %v1551_v9  ;;  %3044 = vmatprep.mubr.msk.f32.mxu0 %vm3294_vm0, %v3293_v1  ;;  %v3206_v9 = vld [vmem:[%s3897_s11 + $0x10] sm:$0xff]  }
 0x412   : > { %3047 = vmatprep.subr.mxu0 %v3293_v1 }
 0x414   : > { %3045 = vmatmul.mubr.msk.f32.vlgmr.msra.gmra.mrb[18].mxu0 %vm1554_vm2, %v1898_v18  ;;  %v2895_v18 = vld [vmem:[%s3896_s10] ss:$0 sm:$0xff] }
 0x415   : > { %3048 = vmatpush3.msra.mxu0 %v1552_v13  ;;  %3049 = vmatprep.mubr.msk.f32.mxu0 %vm3294_vm0, %v3293_v1 }
 0x416   : > { %3052 = vmatprep.subr.mxu0 %v3293_v1 }
 0x418   : > { %3050 = vmatmul.mubr.msk.f32.vlgmr.msra.gmra.mrb[20].mxu0 %vm1554_vm2, %v1900_v26 }
 0x419   : > { %3053 = vmatpush3.msra.mxu0 %v1553_v14  ;;  %3054 = vmatprep.mubr.msk.f32.mxu0 %vm3294_vm0, %v3293_v1 }
 0x41a   : > { %3057 = vmatprep.subr.mxu0 %v3293_v1 }
 0x42d   : > { %v1894_v15 = vpop.xlane.xlu0 %1893 }
 0x42e   : > { %3222 = vrcp.f32 %v1894_v15 }
 0x438   : > { %v3223_v16 = vpop.eup %3222 }
 0x439   : > { %v1902_v17 = vmul.f32 %v3223_v16, %v3717_v24 }
 0x43b   : > { %3055 = vmatmul.mubr.msk.f32.vlgmr.msra.gmra.mrb[22].mxu0 %vm1554_vm2, %v1902_v17 }
 0x43c   : > { %3059 = vmatprep.mubr.msk.f32.mxu0 %vm3294_vm0, %v3293_v1  ;;  %3058 = vmatpush3.msra.mxu0 %v1108_v19 }
 0x43d   : > { %3067 = vmatprep.subr.mxu0 %v3293_v1 }
 0x4e3   : > { %v1972_v6 = vpop.f32.mrb[16].mxu0 }
 0x4e4   : > { %v3041_v20 = vpop.f32.mrb[17].mxu0  ;;  %3060 = vmatmul.mubr.msk.f32.vlgmr.msra.gmra.mrb[24].mxu0 %vm1554_vm2, %v1972_v6 }
 0x4e5   : > { %3068 = vmatpush3.msra.mxu0 %v1110_v7  ;;  %3069 = vmatprep.mubr.msk.f32.mxu0 %vm3294_vm0, %v3293_v1 }
 0x4e6   : > { %3077 = vmatprep.subr.bf16.mxu0 %v3293_v1 }
 0x4e7   : > { %v2045_v22 = vpop.f32.mrb[18].mxu0 }
 0x4e8   : > { %v3046_v23 = vpop.f32.mrb[19].mxu0  ;;  %3065 = vmatmul.mubr.msk.f32.vlgmr.msra.gmra.mrb[8].mxu1 %vm1554_vm2, %v2045_v22 }
 0x4e9   : > { %3073 = vmatpush3.msra.mxu1 %v1111_v21  ;;  %3074 = vmatprep.mubr.msk.f32.mxu1 %vm3294_vm0, %v3293_v1 }
 0x4ea   : > { %3085 = vmatprep.subr.bf16.mxu1 %v3293_v1 }
 0x4eb   : > { %v2118_v24 = vpop.f32.mrb[20].mxu0 }
 0x4ec   : > { %v3051_v25 = vpop.f32.mrb[21].mxu0  ;;  %3070 = vmatmul.mubr.msk.f32.vlgmr.msra.gmra.mrb[26].mxu0 %vm1554_vm2, %v2118_v24 }
 0x4ed   : > { %3081 = vmatprep.mubr.msk.bf16.mxu0 %vm3294_vm0, %v3293_v1  ;;  %3078 = vmatpush3.bf16.msra.mxu0 %v3202_v53 }
 0x4ee   : > { %3079 = vmatprep.subr.bf16.mxu0 %v3293_v1 }
 0x4f1   : > { %3080 = vmatpush3.bf16.msra.mxu0 %v3203_v55 }
 0x50e   : > { %v2191_v27 = vpop.f32.mrb[22].mxu0 }
 0x50f   : > { %v3056_v28 = vpop.f32.mrb[23].mxu0  ;;  %3075 = vmatmul.mubr.msk.f32.vlgmr.msra.gmra.mrb[10].mxu1 %vm1554_vm2, %v2191_v27 }
 0x510   : > { %3093 = vmatprep.mubr.msk.bf16.mxu1 %vm3294_vm0, %v3293_v1  ;;  %3086 = vmatpush3.bf16.msra.mxu1 %v3204_v56 }
 0x511   : > { %3087 = vmatprep.subr.bf16.mxu1 %v3293_v1 }
 0x514   : > { %3088 = vmatpush3.bf16.msra.mxu1 %v3205_v57 }
 0x515   : > { %3089 = vmatprep.subr.bf16.mxu1 %v3293_v1 }
 0x518   : > { %3090 = vmatpush3.bf16.msra.mxu1 %v3206_v9 }
 0x519   : > { %3091 = vmatprep.subr.bf16.mxu1 %v3293_v1  ;;  %v2896_v1 = vld [vmem:[%s3898_s12] ss:$0 sm:$0xff] }
 0x51c   : > { %3092 = vmatpush3.bf16.msra.mxu1 %v3207_v10 }
 0x5b7   : > { %v2264_v29 = vpop.f32.mrb[24].mxu0 }
 0x5b8   : > { %v3061_v30 = vpop.f32.mrb[25].mxu0  ;;  %v2487_v32 = vsel %vm539_vm1, %v2264_v29, 0.0 }
 0x5bb   : > { %v2337_v31 = vpop.f32.mrb[8].mxu1 }
 0x5bc   : > { %v2488_v33 = vsel %vm539_vm1, %v2337_v31, 0.0  ;;  %v3066_v34 = vpop.f32.mrb[9].mxu1 }
 0x5bd   : > { %v2489_v35 = vadd.f32 %v2488_v33, %v2487_v32  ;;  %v2902_v32 = vld [vmem:[%s3899_s13] ss:$0 sm:$0xff] }
 0x5be   : > { %v2903_v34 = vld [vmem:[%s3900_s14] ss:$0 sm:$0xff] }
 0x5bf   : > { %v2410_v5 = vpop.f32.mrb[26].mxu0 }
 0x5c0   : > { %v2490_v36 = vsel %vm539_vm1, %v2410_v5, 0.0  ;;  %v3071_v37 = vpop.f32.mrb[27].mxu0 }
 0x5c1   : > { %v2491_v38 = vadd.f32 %v2490_v36, %v2489_v35 }
 0x5e2   : > { %v2483_v39 = vpop.f32.mrb[10].mxu1 }
 0x5e3   : > { %v2492_v40 = vsel %vm539_vm1, %v2483_v39, 0.0  ;;  %v3076_v42 = vpop.f32.mrb[11].mxu1 }
 0x5e4   : > { %v2493_v43 = vadd.f32 %v2492_v40, %v2491_v38 }
 0x5e6   : > { %v2501_v44 = vadd.f32 %v2889_v41, %v2493_v43 }
 0x5e8   : > { %v2502_v46 = vadd.f32 %v3228_v45, %v2501_v44 }
 0x5ea   : > { %v2505_v47 = vsel %vm539_vm1, %v2502_v46, 0.0 }
 0x5eb   : > { %2506 = vadd.xlane.f32.xlu0 %v2505_v47 }
 0x678   : > { %v2507_v48 = vpop.xlane.xlu0 %2506 }
 0x679   : > { %v2509_v49 = vmul.f32 0.03125, %v2507_v48 }
 0x67b   : > { %v2510_v50 = vsub.f32 %v2502_v46, %v2509_v49 }
 0x67d   : > { %v2511_v51 = vmul.f32 %v2510_v50, %v2510_v50 }
 0x67f   : > { %v2512_v52 = vsel %vm539_vm1, %v2511_v51, 0.0 }
 0x680   : > { %2513 = vadd.xlane.f32.xlu1 %v2512_v52 }
 0x70d   : > { %v2514_v58 = vpop.xlane.xlu1 %2513 }
 0x70e   : > { %v2515_v59 = vmul.f32 0.03125, %v2514_v58 }
 0x710   : > { %v2516_v60 = vadd.f32 1e-05, %v2515_v59 }
 0x712   : > { %3224 = vrsqrt.f32 %v2516_v60 }
 0x71c   : > { %v3225_v61 = vpop.eup %3224 }
 0x71d   : > { %v2518_v0 = vmul.f32 %v3225_v61, %v2510_v50 }
 0x71f   : > { %v2525_v3 = vmul.f32 %v2890_v63, %v2518_v0 }
 0x721   : > { %v2532_v4 = vadd.f32 %v2891_v2, %v2525_v3 }
 0x723   : > { %v2533_v8 = vpack.c.bf16 %v2532_v4, %v2532_v4 }
 0x725   : > { %3082 = vmatmul.mubr.msk.bf16.vlgmr.msra.gmra.mrb[28].mxu0 %vm539_vm1, %v2533_v8 }
 0x7f8   : > { %v2587_v11 = vpop.f32.mrb[28].mxu0 }
 0x7f9   : > { %v2588_v12 = vadd.f32 %v2587_v11, %v3698_v54  ;;  %v3083_v13 = vpop.f32.mrb[29].mxu0 }
 0x7fa   : > { %v2590_v26 = vpop.f32.mrb[30].mxu0 }
 0x7fb   : > { %v2600_v14 = vadd.f32 %v2895_v18, %v2588_v12  ;;  %v3084_v15 = vpop.f32.mrb[31].mxu0 }
 0x7fd   : > { %v2601_v16 = vmax.f32 %v2600_v14, 0.0 }
 0x7ff   : > { %v2602_v17 = vpack.c.bf16 %v2601_v16, %v2601_v16 }
 0x801   : > { %3094 = vmatmul.mubr.msk.bf16.vlgmr.msra.gmra.mrb[12].mxu1 %vm2642_vm3, %v2602_v17 }
 0x8d4   : > { %v2680_v19 = vpop.f32.mrb[12].mxu1 }
 0x8d5   : > { %v2681_v62 = vadd.f32 %v2896_v1, %v2680_v19  ;;  %v3095_v7 = vpop.f32.mrb[13].mxu1 }
 0x8d6   : > { %v2683_v6 = vpop.f32.mrb[14].mxu1 }
 0x8d7   : > { %v3096_v20 = vpop.f32.mrb[15].mxu1  ;;  %v2686_v21 = vadd.f32 %v2681_v62, %v2532_v4 }
 0x8d9   : > { %v2689_v54 = vsel %vm539_vm1, %v2686_v21, 0.0 }
 0x8da   : > { %2690 = vadd.xlane.f32.xlu0 %v2689_v54 }
 0x967   : > { %v2691_v22 = vpop.xlane.xlu0 %2690 }
 0x968   : > { %v2692_v23 = vmul.f32 0.03125, %v2691_v22 }
 0x96a   : > { %v2693_v24 = vsub.f32 %v2686_v21, %v2692_v23 }
 0x96c   : > { %v2694_v25 = vmul.f32 %v2693_v24, %v2693_v24 }
 0x96e   : > { %v2695_v27 = vsel %vm539_vm1, %v2694_v25, 0.0 }
 0x96f   : > { %2696 = vadd.xlane.f32.xlu1 %v2695_v27 }
 0x9fc   : > { %v2697_v28 = vpop.xlane.xlu1 %2696 }
 0x9fd   : > { %v2698_v29 = vmul.f32 0.03125, %v2697_v28 }
 0x9ff   : > { %v2699_v30 = vadd.f32 1e-05, %v2698_v29 }
 0xa01   : > { %3226 = vrsqrt.f32 %v2699_v30 }
 0xa0b   : > { %v3227_v31 = vpop.eup %3226 }
 0xa0c   : > { %v2701_v33 = vmul.f32 %v3227_v31, %v2693_v24 }
 0xa0e   : > { %v2708_v35 = vmul.f32 %v2902_v32, %v2701_v33 }
 0xa10   : > { %v2715_v5 = vadd.f32 %v2903_v34, %v2708_v35 }
 0xa12   : > { %2716 = vst.msk [vmem:[%s500_s25] sm:$0xff] %vm539_vm1, %v2715_v5 }
 0xa13   : > { %3242 = shalt.err (!%p3239_p3)
}
 0xa14   : > { %s3243_s2 = scalar_lea.hbm %s3843_s16, 128  ;;  %s3247_s3 = scalar_lea.hbm %s3901_s15, 256 }
 0xa15   : > { %p3244_p4 = scmp.ne.s32.totalorder %s3843_s16, %s3243_s2  ;;  %p3248_p9 = scmp.lt.u32.totalorder %s3843_s16, %s3901_s15 }
 0xa16   : > { %p3249_p10 = scmp.lt.u32.totalorder %s3247_s3, %s3243_s2  ;;  %p3251_p12 = scmp.lt.u32.totalorder %s3243_s2, %s3843_s16 }
 0xa17   : > { %p3245_p7 = pnand %p3244_p4, %p3421_p5 }
 0xa18   : > { %p3250_p11 = por %p3249_p10, %p3248_p9 }
 0xa19   : > { %p3246_p8 = pneg %p3245_p7 }
 0xa1a   : > { %p3252_p13 = por %p3251_p12, %p3250_p11 }
 0xa1c   : > { %p3253_p0 = pnand %p3252_p13, %p3246_p8 }
 0xa1e   : > { %3256 = shalt.err (!%p3253_p0)
}
 0xa1f   : > { %3098 = dma.vmem_to_hbm [thread:$0]  (%p3421_p5), %s3845_s24, 128, %s3843_s16, %s2718_s23  }
 0xa20 PF: > { %p3104_p1 = scmp.ge.s32.totalorder %s3291_s21, 2  ;;  %s2743_s30 = sand.u32 1, %s3279_s18  }
 0xa21   : > { %s2744_s22 = scalar_lea.sflag [#allocation3], %s2743_s30 }
 0xa22   : > { %p3101_p2 = pnand %p3104_p1, %p3425_p6 }
 0xa24   : > { %3274 = dma.done.wait (!%p3101_p2), %s2744_s22, 128  }
 0xa25   : > { %3276 = vsyncadd (!%p3101_p2), %s2744_s22, 4294967168  ;;  %s3922_s21 = sld [smem:[#allocation6_spill]]  ;;  %s3923_s26 = sld [smem:[#allocation5_spill]] }
 0xa26   : > { %s3924_s20 = sld [smem:[#allocation7_spill]]  ;;  %s3925_s18 = smov %s3283_s19 }
 0xa2b   : > { %p25_p3 = scmp.ge.s32.totalorder %s3922_s21, 4   ;;  %s3926_s19 = smov %s3923_s26 }
 0xa2d   :  { %27 = sbr.rel (!%p25_p3) target bundleno = 7 (0x7), region = 118 }
 0xa34   :  { %2749 = vsyncpa [#allocation3], 1 }
 0xa35   :  { %2751 = vsyncpa [#allocation3 + $0x1], 1 }

</bundles_post_ra>
